<compile_context>
chip_gen: v7x
topology: tpu7x:2x2x1
jax: 0.10.0
libtpu: 0.0.40
codegen_flags: <defaults>
</compile_context>

<pallas_src>
import functools

import jax
import jax.numpy as jnp
from jax import lax
from jax.experimental import pallas as pl
from jax.experimental.pallas import tpu as pltpu


def _softplus(x):
    # Matches torch.nn.Softplus(beta=1, threshold=20), computed in f32.
    return jnp.where(x > 20.0, x, jnp.log1p(jnp.exp(jnp.minimum(x, 20.0))))


# ----------------------------------------------------------------------------
# Kernel: full fused MLP for one batch tile.  Generic over C "chains" of
# hidden width Hk (C=1 block-diag-packed, or C=2 per-chain).  Runs entirely in
# VMEM on the MXU; weights stay resident across batch grid steps.
# ----------------------------------------------------------------------------
def _mlp_kernel(x_ref, w0_ref, b0_ref, wh_ref, bh_ref, wout_ref, bout_ref,
                out_ref):
    """x_ref   : (TB, W)          f32 (cast to weight dtype in-kernel)
       w0_ref  : (C, W, Hk)       bf16   b0_ref  : (C, 1, Hk)    f32
       wh_ref  : (nH, C, Hk, Hk)  bf16   bh_ref  : (nH, C, 1, Hk) f32
       wout_ref: (C, Hk, W)       bf16   bout_ref: (1, W)         f32
       out_ref : (TB, W)          f32
    """
    C = w0_ref.shape[0]
    n_hlayer = wh_ref.shape[0]
    wdt = w0_ref.dtype  # matmul input dtype (bf16)

    x = x_ref[...].astype(wdt)  # in-kernel cast (no wrapper HBM pass)

    hs = tuple(
        jnp.dot(x, w0_ref[c], preferred_element_type=jnp.float32) + b0_ref[c]
        for c in range(C))

    def layer(i, hs):
        w = wh_ref[i]   # (C, Hk, Hk)
        b = bh_ref[i]   # (C, 1, Hk)
        return tuple(
            jnp.dot(_softplus(h).astype(wdt), w[c],
                    preferred_element_type=jnp.float32) + b[c]
            for c, h in enumerate(hs))

    if n_hlayer <= 4:
        # Small static depth: straight-line unroll.
        for i in range(n_hlayer):
            hs = layer(i, hs)
    else:
        # Deeper stacks: explicit (unrolled) loop structure for the scheduler.
        # NOTE: for very large nH * Hk^2 on v7x (64 MiB VMEM) the resident
        # weight stack should instead be streamed per-layer with
        # memory_space=pl.ANY + make_async_copy double-buffering.
        hs = lax.fori_loop(0, n_hlayer, layer, hs, unroll=True)

    # Output layer: the (out2, out1) interleave is baked into wout/bout, so
    # the chain contributions simply sum into the final (TB, W) slab.
    out = bout_ref[...]
    for c, h in enumerate(hs):
        out = out + jnp.dot(_softplus(h).astype(wdt), wout_ref[c],
                            preferred_element_type=jnp.float32)
    # NOTE: W << 128 means this is a masked (vst.msk) store; if profiling
    # shows a wall-vs-compute gap, repack the output as a lane-dense
    # (Bp*W/128, 128) slab instead.
    out_ref[...] = out.astype(out_ref.dtype)


# ----------------------------------------------------------------------------
# Tiling / VMEM-limit helpers.
# ----------------------------------------------------------------------------
def _round_up(a, m):
    return -(-a // m) * m


def _choose_tile(B, tb_max):
    """Pick (TB, padded B).  tb_max forced to a multiple of 8; for B > 16 the
    grid always has >= 2 tiles so both v7x TensorCores get work, and TB is
    sized so padding stays close to B."""
    tb_max = max(8, (int(tb_max) // 8) * 8)
    if B <= 16:
        return B, B  # single full-batch tile (block == full dims is legal)
    n_tiles_target = max(2, -(-B // tb_max))
    TB = min(tb_max, _round_up(-(-B // n_tiles_target), 8))
    return TB, _round_up(B, TB)


def _pick_vmem_limit(need_bytes):
    """Scoped-VMEM limit from actual buffer sizes, clamped to physical VMEM
    when discoverable (128 MiB v5e/v6e, 64 MiB v7x)."""
    cap = 100 << 20
    try:
        cap = min(cap, int(pltpu.get_tpu_info().vmem_capacity_bytes) * 3 // 4)
    except Exception:
        pass
    return int(min(max(32 << 20, int(need_bytes)), cap))


# ----------------------------------------------------------------------------
# pallas_call wrapper: batch-tiled parallel grid, weights resident.
# ----------------------------------------------------------------------------
def _run_packed(x, packed, t, *, tb_max=1024):
    B, W = x.shape
    w0x, w0t, b0 = packed["w0x"], packed["w0t"], packed["b0"]
    wh, bh = packed["wh"], packed["bh"]
    wout, bout = packed["wout"], packed["bout"]
    C, _, Hk = w0x.shape
    nH = wh.shape[0]

    # Fold the `tt` time column into the first-layer bias (tiny f32 op).
    b0_eff = b0 + t * w0t                                   # (C, 1, Hk)

    TB, Bp = _choose_tile(B, tb_max)
    if Bp != B:
        x = jnp.pad(x, ((0, Bp - B), (0, 0)))
    grid_b = Bp // TB

    # Cost / VMEM bookkeeping (all static Python ints).
    wbytes = w0x.dtype.itemsize
    weight_bytes = (w0x.size + wh.size + wout.size) * wbytes
    bias_bytes = (b0.size + bh.size + bout.size) * 4
    flops = 2 * Bp * C * (W * Hk + nH * Hk * Hk + Hk * W)
    transcendentals = 2 * Bp * C * Hk * (nH + 1)            # exp + log / softplus
    bytes_accessed = 2 * Bp * W * 4 + weight_bytes + bias_bytes

    vmem_need = (2 * (weight_bytes + bias_bytes)    # default double-buffering
                 + 2 * 2 * TB * W * 4               # x / out tiles
                 + 6 * C * TB * max(Hk, 128) * 4    # f32 activation headroom
                 + (4 << 20))
    vmem_limit = _pick_vmem_limit(vmem_need)

    out = pl.pallas_call(
        _mlp_kernel,
        out_shape=jax.ShapeDtypeStruct((Bp, W), jnp.float32),
        grid=(grid_b,),
        in_specs=[
            pl.BlockSpec((TB, W), lambda b: (b, 0)),
            # Weights/biases: constant index_maps -> DMA'd once, VMEM-resident
            # across batch steps.  (pipeline_mode=pl.Buffered(1) would halve
            # their VMEM footprint; per-layer streaming via pl.ANY + manual
            # DMA is the escape hatch for very large stacks on v7x.)
            pl.BlockSpec(w0x.shape, lambda b: (0, 0, 0)),
            pl.BlockSpec(b0_eff.shape, lambda b: (0, 0, 0)),
            pl.BlockSpec(wh.shape, lambda b: (0, 0, 0, 0)),
            pl.BlockSpec(bh.shape, lambda b: (0, 0, 0, 0)),
            pl.BlockSpec(wout.shape, lambda b: (0, 0, 0)),
            pl.BlockSpec(bout.shape, lambda b: (0, 0)),
        ],
        out_specs=pl.BlockSpec((TB, W), lambda b: (b, 0)),
        compiler_params=pltpu.CompilerParams(
            dimension_semantics=("parallel",),   # batch axis -> 2 TCs on v7x
            vmem_limit_bytes=vmem_limit,
        ),
        cost_estimate=pl.CostEstimate(
            flops=int(flops),
            transcendentals=int(transcendentals),
            bytes_accessed=int(bytes_accessed)),
    )(x, w0x, b0_eff, wh, bh, wout, bout)
    return out[:B] if Bp != B else out


# ----------------------------------------------------------------------------
# Parameter construction / packing.
# ----------------------------------------------------------------------------
def init_dnn_block_params(key, io_dim, hidden_dim, n_hlayer):
    """Per-chain params mirroring torch.nn.Linear default init."""
    assert io_dim % 2 == 0 and n_hlayer >= 1
    D_half = io_dim // 2
    D_in = D_half + 1
    H = hidden_dim

    def linear(key, fan_in, fan_out):
        kw, kb = jax.random.split(key)
        bound = 1.0 / jnp.sqrt(float(fan_in))
        w = jax.random.uniform(kw, (fan_in, fan_out), jnp.float32, -bound, bound)
        b = jax.random.uniform(kb, (1, fan_out), jnp.float32, -bound, bound)
        return w, b

    params = {"w0": [], "b0": [], "wh": [], "bh": [], "wout": [], "bout": []}
    for _ in range(2):  # chain1, chain2
        key, k0, kout = jax.random.split(key, 3)
        w0, b0 = linear(k0, D_in, H)
        whs, bhs = [], []
        for _ in range(n_hlayer):
            key, kh = jax.random.split(key)
            wh_i, bh_i = linear(kh, H, H)
            whs.append(wh_i)
            bhs.append(bh_i)
        wout, bout = linear(kout, H, D_half)
        params["w0"].append(w0)
        params["b0"].append(b0)
        params["wh"].append(jnp.stack(whs))            # (nH, H, H)
        params["bh"].append(jnp.stack(bhs))            # (nH, 1, H)
        params["wout"].append(wout)
        params["bout"].append(bout)
    return {k: jnp.stack(v) for k, v in params.items()}   # leading chain axis 2


def pack_dnn_block_params(params, weight_dtype=jnp.bfloat16):
    """Fold de-interleave / tt-column / output-interleave into the weights.

    Layout is chosen by hidden width:
      * 2H <= 128 : block-diagonal packing (C=1, Hk=2H) — fills MXU lanes.
      * 2H  > 128 : per-chain weights (C=2, Hk=H) — no wasted MACs/VMEM.
    """
    w0, b0 = params["w0"], params["b0"]            # (2, Din, H), (2, 1, H)
    wh, bh = params["wh"], params["bh"]            # (2,nH,H,H), (2,nH,1,H)
    wout, bout = params["wout"], params["bout"]    # (2, H, Dh), (2, 1, Dh)
    nH, H = wh.shape[1], w0.shape[2]
    Dh = wout.shape[2]
    W = 2 * Dh
    use_blockdiag = (2 * H <= 128)

    # chain 0 (chain1) reads even x columns and writes odd output columns;
    # chain 1 (chain2) reads odd x columns and writes even output columns.
    def expand_in(w_c, c):     # (Dh, H) -> (W, H): row 2j+c <- w_c[j]
        return jnp.zeros((W, w_c.shape[1]), w_c.dtype).at[c::2, :].set(w_c)

    def expand_out(w_c, c):    # (H, Dh) -> (H, W): col 2j+(1-c) <- w_c[:, j]
        return jnp.zeros((w_c.shape[0], W), w_c.dtype).at[:, (1 - c)::2].set(w_c)

    def bdiag(a, b):
        ra, ca = a.shape
        rb, cb = b.shape
        top = jnp.concatenate([a, jnp.zeros((ra, cb), a.dtype)], axis=1)
        bot = jnp.concatenate([jnp.zeros((rb, ca), b.dtype), b], axis=1)
        return jnp.concatenate([top, bot], axis=0)

    w0x_c = [expand_in(w0[c, 1:], c) for c in range(2)]        # each (W, H)
    w0t_c = [w0[c, 0:1, :] for c in range(2)]                  # each (1, H)
    wout_c = [expand_out(wout[c], c) for c in range(2)]        # each (H, W)
    bout_full = jnp.zeros((1, W), jnp.float32)
    bout_full = bout_full.at[:, 1::2].set(bout[0]).at[:, 0::2].set(bout[1])

    if use_blockdiag:
        w0x = jnp.concatenate(w0x_c, axis=1)[None]             # (1, W, 2H)
        w0t = jnp.concatenate(w0t_c, axis=1)[None]             # (1, 1, 2H)
        b0p = jnp.concatenate([b0[0], b0[1]], axis=1)[None]    # (1, 1, 2H)
        whp = jnp.stack([bdiag(wh[0, i], wh[1, i])
                         for i in range(nH)])[:, None]         # (nH,1,2H,2H)
        bhp = jnp.stack([jnp.concatenate([bh[0, i], bh[1, i]], axis=1)
                         for i in range(nH)])[:, None]         # (nH,1,1,2H)
        woutp = jnp.concatenate(wout_c, axis=0)[None]          # (1, 2H, W)
    else:
        w0x = jnp.stack(w0x_c)                                 # (2, W, H)
        w0t = jnp.stack(w0t_c)                                 # (2, 1, H)
        b0p = b0                                               # (2, 1, H)
        whp = jnp.transpose(wh, (1, 0, 2, 3))                  # (nH, 2, H, H)
        bhp = jnp.transpose(bh, (1, 0, 2, 3))                  # (nH, 2, 1, H)
        woutp = jnp.stack(wout_c)                              # (2, H, W)

    return {
        "w0x": w0x.astype(weight_dtype),
        # w0t kept f32 but round-tripped through the weight dtype so the
        # runtime t-fold matches a bf16 matmul of the t column.
        "w0t": w0t.astype(weight_dtype).astype(jnp.float32),
        "b0": b0p.astype(jnp.float32),
        "wh": whp.astype(weight_dtype),
        "bh": bhp.astype(jnp.float32),
        "wout": woutp.astype(weight_dtype),
        "bout": bout_full.astype(jnp.float32),
    }


# ----------------------------------------------------------------------------
# Forward pass (equivalent of DNNBlock.forward(t, x)).
# ----------------------------------------------------------------------------
@functools.partial(jax.jit, static_argnames=("tb_max",))
def dnn_block_forward(t, x, packed, *, tb_max=1024):
    """x: (B, W) float32, t: scalar.  Returns (B, W) float32."""
    # All input/output assembly (de-interleave, tt column, final interleave)
    # is folded into the packed weights; the kernel consumes x directly.
    # TODO(synk): the PyTorch module's self.nfe call counter is host-side
    # Python state and has no tensor equivalent here.
    x = x.astype(jnp.float32)
    t = jnp.asarray(t, jnp.float32)
    return _run_packed(x, packed, t, tb_max=tb_max)


# ----------------------------------------------------------------------------
# Pure-JAX reference mirroring the PyTorch module structure (per-chain),
# with the same bf16 matmul-input casts as the kernel.
# ----------------------------------------------------------------------------
def _reference_forward(t, x, params, weight_dtype=jnp.bfloat16):
    B, W = x.shape
    x_r = x.reshape(B, W // 2, 2)
    x1, x2 = x_r[:, :, 0], x_r[:, :, 1]
    tt = jnp.full((B, 1), t, dtype=x.dtype)

    def chain(c, inp):
        h = jnp.dot(inp.astype(weight_dtype),
                    params["w0"][c].astype(weight_dtype),
                    preferred_element_type=jnp.float32) + params["b0"][c]
        for i in range(params["wh"].shape[1]):
            h = _softplus(h)
            h = jnp.dot(h.astype(weight_dtype),
                        params["wh"][c, i].astype(weight_dtype),
                        preferred_element_type=jnp.float32) + params["bh"][c, i]
        h = _softplus(h)
        return jnp.dot(h.astype(weight_dtype),
                       params["wout"][c].astype(weight_dtype),
                       preferred_element_type=jnp.float32) + params["bout"][c]

    out1 = chain(0, jnp.concatenate([tt, x1], axis=1))
    out2 = chain(1, jnp.concatenate([tt, x2], axis=1))
    return jnp.stack([out2, out1], axis=2).reshape(B, W)


if __name__ == "__main__":
    # Config 1: 2H <= 128 -> block-diag lane-packed path, single batch tile,
    # static hidden-layer unroll.
    io_dim, hidden_dim, n_hlayer = 8, 32, 2
    B, t = 4, 0.5
    kp, kx = jax.random.split(jax.random.PRNGKey(0))
    params = init_dnn_block_params(kp, io_dim, hidden_dim, n_hlayer)
    packed = pack_dnn_block_params(params)
    x = jax.random.normal(kx, (B, io_dim), dtype=jnp.float32)

    out = jax.block_until_ready(dnn_block_forward(jnp.float32(t), x, packed))
    ref = _reference_forward(jnp.float32(t), x, params)
    assert out.shape == (B, io_dim)
    assert jnp.allclose(out, ref, atol=5e-3, rtol=5e-3), float(
        jnp.max(jnp.abs(out - ref)))

    # Config 2: 2H > 128 -> per-chain (no block-diag waste) path, multi-tile
    # parallel batch grid with padding, fori_loop hidden layers (n_hlayer > 4).
    io2, h2, nH2, B2 = 8, 128, 5, 20
    kp2, kx2 = jax.random.split(jax.random.PRNGKey(1))
    params2 = init_dnn_block_params(kp2, io2, h2, nH2)
    packed2 = pack_dnn_block_params(params2)
    x2 = jax.random.normal(kx2, (B2, io2), dtype=jnp.float32)
    out2 = jax.block_until_ready(
        dnn_block_forward(jnp.float32(0.25), x2, packed2, tb_max=8))
    ref2 = _reference_forward(jnp.float32(0.25), x2, params2)
    assert out2.shape == (B2, io2)
    assert jnp.allclose(out2, ref2, atol=5e-3, rtol=5e-3), float(
        jnp.max(jnp.abs(out2 - ref2)))

    print("KERNEL_OK")
</pallas_src>

<mosaic_0001>
module attributes {stable_mosaic.version = 11 : i64} {
  func.func @_mlp_kernel(%arg0: i32, %arg1: memref<4x8xf32, #tpu.memory_space<vmem>>, %arg2: memref<1x8x64xbf16, #tpu.memory_space<vmem>>, %arg3: memref<1x1x64xf32, #tpu.memory_space<vmem>>, %arg4: memref<2x1x64x64xbf16, #tpu.memory_space<vmem>>, %arg5: memref<2x1x1x64xf32, #tpu.memory_space<vmem>>, %arg6: memref<1x64x8xbf16, #tpu.memory_space<vmem>>, %arg7: memref<1x8xf32, #tpu.memory_space<vmem>>, %arg8: memref<4x8xf32, #tpu.memory_space<vmem>>) attributes {dimension_semantics = [#tpu.dimension_semantics<parallel>], iteration_bounds = array<i64: 1>, scalar_prefetch = 0 : i64, scratch_operands = 0 : i64, tpu.core_type = #tpu.core_type<tc>, window_params = [{transform_indices = @transform_0, window_bounds = array<i64: 4, 8>}, {pipeline_mode = #tpu.pipeline_mode<synchronous>, transform_indices = @transform_1, window_bounds = array<i64: 1, 8, 64>}, {pipeline_mode = #tpu.pipeline_mode<synchronous>, transform_indices = @transform_2, window_bounds = array<i64: 1, 1, 64>}, {pipeline_mode = #tpu.pipeline_mode<synchronous>, transform_indices = @transform_3, window_bounds = array<i64: 2, 1, 64, 64>}, {pipeline_mode = #tpu.pipeline_mode<synchronous>, transform_indices = @transform_4, window_bounds = array<i64: 2, 1, 1, 64>}, {pipeline_mode = #tpu.pipeline_mode<synchronous>, transform_indices = @transform_5, window_bounds = array<i64: 1, 64, 8>}, {pipeline_mode = #tpu.pipeline_mode<synchronous>, transform_indices = @transform_6, window_bounds = array<i64: 1, 8>}, {transform_indices = @transform_7, window_bounds = array<i64: 4, 8>}]} {
    %c0 = arith.constant 0 : index
    %c0_0 = arith.constant 0 : index
    %0 = vector.load %arg1[%c0, %c0_0] : memref<4x8xf32, #tpu.memory_space<vmem>>, vector<4x8xf32>
    %1 = arith.truncf %0 : vector<4x8xf32> to vector<4x8xbf16>
    %c0_1 = arith.constant 0 : index
    %c0_2 = arith.constant 0 : index
    %c0_3 = arith.constant 0 : index
    %2 = vector.load %arg2[%c0_1, %c0_2, %c0_3] : memref<1x8x64xbf16, #tpu.memory_space<vmem>>, vector<1x8x64xbf16>
    %3 = vector.shape_cast %2 : vector<1x8x64xbf16> to vector<8x64xbf16>
    %cst = arith.constant dense<0.000000e+00> : vector<4x64xf32>
    %4 = tpu.matmul %1, %3, %cst {dimension_numbers = #tpu.dot_dimension_numbers<[1], [0], [0], [1], [0, 0, 1, 1], [], []>} : vector<4x8xbf16>, vector<8x64xbf16>, vector<4x64xf32> -> vector<4x64xf32>
    %c0_4 = arith.constant 0 : index
    %c0_5 = arith.constant 0 : index
    %c0_6 = arith.constant 0 : index
    %5 = vector.load %arg3[%c0_4, %c0_5, %c0_6] : memref<1x1x64xf32, #tpu.memory_space<vmem>>, vector<1x1x64xf32>
    %6 = vector.shape_cast %5 : vector<1x1x64xf32> to vector<1x64xf32>
    %7 = vector.broadcast %6 : vector<1x64xf32> to vector<4x64xf32>
    %8 = arith.addf %4, %7 : vector<4x64xf32>
    %c0_7 = arith.constant 0 : index
    %c0_8 = arith.constant 0 : index
    %c0_9 = arith.constant 0 : index
    %c0_10 = arith.constant 0 : index
    %9 = vector.load %arg4[%c0_7, %c0_8, %c0_9, %c0_10] : memref<2x1x64x64xbf16, #tpu.memory_space<vmem>>, vector<1x1x64x64xbf16>
    %10 = vector.shape_cast %9 : vector<1x1x64x64xbf16> to vector<1x64x64xbf16>
    %c0_11 = arith.constant 0 : index
    %c0_12 = arith.constant 0 : index
    %c0_13 = arith.constant 0 : index
    %c0_14 = arith.constant 0 : index
    %11 = vector.load %arg5[%c0_11, %c0_12, %c0_13, %c0_14] : memref<2x1x1x64xf32, #tpu.memory_space<vmem>>, vector<1x1x1x64xf32>
    %12 = vector.shape_cast %11 : vector<1x1x1x64xf32> to vector<1x1x64xf32>
    %cst_15 = arith.constant 2.000000e+01 : f32
    %13 = vector.broadcast %cst_15 : f32 to vector<4x64xf32>
    %14 = arith.cmpf ogt, %8, %13 : vector<4x64xf32>
    %cst_16 = arith.constant 2.000000e+01 : f32
    %15 = vector.broadcast %cst_16 : f32 to vector<4x64xf32>
    %16 = arith.minimumf %8, %15 : vector<4x64xf32>
    %17 = math.exp %16 : vector<4x64xf32>
    %18 = math.log1p %17 : vector<4x64xf32>
    %19 = arith.select %14, %8, %18 : vector<4x64xi1>, vector<4x64xf32>
    %20 = arith.truncf %19 : vector<4x64xf32> to vector<4x64xbf16>
    %21 = vector.shape_cast %10 : vector<1x64x64xbf16> to vector<64x64xbf16>
    %cst_17 = arith.constant dense<0.000000e+00> : vector<4x64xf32>
    %22 = tpu.matmul %20, %21, %cst_17 {dimension_numbers = #tpu.dot_dimension_numbers<[1], [0], [0], [1], [0, 0, 1, 1], [], []>} : vector<4x64xbf16>, vector<64x64xbf16>, vector<4x64xf32> -> vector<4x64xf32>
    %23 = vector.shape_cast %12 : vector<1x1x64xf32> to vector<1x64xf32>
    %24 = vector.broadcast %23 : vector<1x64xf32> to vector<4x64xf32>
    %25 = arith.addf %22, %24 : vector<4x64xf32>
    %c1 = arith.constant 1 : index
    %c0_18 = arith.constant 0 : index
    %c0_19 = arith.constant 0 : index
    %c0_20 = arith.constant 0 : index
    %26 = vector.load %arg4[%c1, %c0_18, %c0_19, %c0_20] : memref<2x1x64x64xbf16, #tpu.memory_space<vmem>>, vector<1x1x64x64xbf16>
    %27 = vector.shape_cast %26 : vector<1x1x64x64xbf16> to vector<1x64x64xbf16>
    %c1_21 = arith.constant 1 : index
    %c0_22 = arith.constant 0 : index
    %c0_23 = arith.constant 0 : index
    %c0_24 = arith.constant 0 : index
    %28 = vector.load %arg5[%c1_21, %c0_22, %c0_23, %c0_24] : memref<2x1x1x64xf32, #tpu.memory_space<vmem>>, vector<1x1x1x64xf32>
    %29 = vector.shape_cast %28 : vector<1x1x1x64xf32> to vector<1x1x64xf32>
    %cst_25 = arith.constant 2.000000e+01 : f32
    %30 = vector.broadcast %cst_25 : f32 to vector<4x64xf32>
    %31 = arith.cmpf ogt, %25, %30 : vector<4x64xf32>
    %cst_26 = arith.constant 2.000000e+01 : f32
    %32 = vector.broadcast %cst_26 : f32 to vector<4x64xf32>
    %33 = arith.minimumf %25, %32 : vector<4x64xf32>
    %34 = math.exp %33 : vector<4x64xf32>
    %35 = math.log1p %34 : vector<4x64xf32>
    %36 = arith.select %31, %25, %35 : vector<4x64xi1>, vector<4x64xf32>
    %37 = arith.truncf %36 : vector<4x64xf32> to vector<4x64xbf16>
    %38 = vector.shape_cast %27 : vector<1x64x64xbf16> to vector<64x64xbf16>
    %cst_27 = arith.constant dense<0.000000e+00> : vector<4x64xf32>
    %39 = tpu.matmul %37, %38, %cst_27 {dimension_numbers = #tpu.dot_dimension_numbers<[1], [0], [0], [1], [0, 0, 1, 1], [], []>} : vector<4x64xbf16>, vector<64x64xbf16>, vector<4x64xf32> -> vector<4x64xf32>
    %40 = vector.shape_cast %29 : vector<1x1x64xf32> to vector<1x64xf32>
    %41 = vector.broadcast %40 : vector<1x64xf32> to vector<4x64xf32>
    %42 = arith.addf %39, %41 : vector<4x64xf32>
    %c0_28 = arith.constant 0 : index
    %c0_29 = arith.constant 0 : index
    %43 = vector.load %arg7[%c0_28, %c0_29] : memref<1x8xf32, #tpu.memory_space<vmem>>, vector<1x8xf32>
    %cst_30 = arith.constant 2.000000e+01 : f32
    %44 = vector.broadcast %cst_30 : f32 to vector<4x64xf32>
    %45 = arith.cmpf ogt, %42, %44 : vector<4x64xf32>
    %cst_31 = arith.constant 2.000000e+01 : f32
    %46 = vector.broadcast %cst_31 : f32 to vector<4x64xf32>
    %47 = arith.minimumf %42, %46 : vector<4x64xf32>
    %48 = math.exp %47 : vector<4x64xf32>
    %49 = math.log1p %48 : vector<4x64xf32>
    %50 = arith.select %45, %42, %49 : vector<4x64xi1>, vector<4x64xf32>
    %51 = arith.truncf %50 : vector<4x64xf32> to vector<4x64xbf16>
    %c0_32 = arith.constant 0 : index
    %c0_33 = arith.constant 0 : index
    %c0_34 = arith.constant 0 : index
    %52 = vector.load %arg6[%c0_32, %c0_33, %c0_34] : memref<1x64x8xbf16, #tpu.memory_space<vmem>>, vector<1x64x8xbf16>
    %53 = vector.shape_cast %52 : vector<1x64x8xbf16> to vector<64x8xbf16>
    %cst_35 = arith.constant dense<0.000000e+00> : vector<4x8xf32>
    %54 = tpu.matmul %51, %53, %cst_35 {dimension_numbers = #tpu.dot_dimension_numbers<[1], [0], [0], [1], [0, 0, 1, 1], [], []>} : vector<4x64xbf16>, vector<64x8xbf16>, vector<4x8xf32> -> vector<4x8xf32>
    %55 = vector.broadcast %43 : vector<1x8xf32> to vector<4x8xf32>
    %56 = arith.addf %55, %54 : vector<4x8xf32>
    %c0_36 = arith.constant 0 : index
    %c0_37 = arith.constant 0 : index
    %57 = vector.load %arg8[%c0_36, %c0_37] : memref<4x8xf32, #tpu.memory_space<vmem>>, vector<4x8xf32>
    tpu.vector_store %arg8[%c0_36, %c0_37], %56 {strides = array<i32>} : memref<4x8xf32, #tpu.memory_space<vmem>>, vector<4x8xf32>,
    return
  }
  func.func @transform_0(%arg0: i32) -> (i32, i32) {
    %c0_i32 = arith.constant 0 : i32
    %c0_i32_0 = arith.constant 0 : i32
    return %arg0, %c0_i32 : i32, i32
  }
  func.func @transform_1(%arg0: i32) -> (i32, i32, i32) {
    %c0_i32 = arith.constant 0 : i32
    %c0_i32_0 = arith.constant 0 : i32
    %c0_i32_1 = arith.constant 0 : i32
    %c0_i32_2 = arith.constant 0 : i32
    return %c0_i32, %c0_i32_0, %c0_i32_1 : i32, i32, i32
  }
  func.func @transform_2(%arg0: i32) -> (i32, i32, i32) {
    %c0_i32 = arith.constant 0 : i32
    %c0_i32_0 = arith.constant 0 : i32
    %c0_i32_1 = arith.constant 0 : i32
    %c0_i32_2 = arith.constant 0 : i32
    return %c0_i32, %c0_i32_0, %c0_i32_1 : i32, i32, i32
  }
  func.func @transform_3(%arg0: i32) -> (i32, i32, i32, i32) {
    %c0_i32 = arith.constant 0 : i32
    %c0_i32_0 = arith.constant 0 : i32
    %c0_i32_1 = arith.constant 0 : i32
    %c0_i32_2 = arith.constant 0 : i32
    %c0_i32_3 = arith.constant 0 : i32
    return %c0_i32, %c0_i32_0, %c0_i32_1, %c0_i32_2 : i32, i32, i32, i32
  }
  func.func @transform_4(%arg0: i32) -> (i32, i32, i32, i32) {
    %c0_i32 = arith.constant 0 : i32
    %c0_i32_0 = arith.constant 0 : i32
    %c0_i32_1 = arith.constant 0 : i32
    %c0_i32_2 = arith.constant 0 : i32
    %c0_i32_3 = arith.constant 0 : i32
    return %c0_i32, %c0_i32_0, %c0_i32_1, %c0_i32_2 : i32, i32, i32, i32
  }
  func.func @transform_5(%arg0: i32) -> (i32, i32, i32) {
    %c0_i32 = arith.constant 0 : i32
    %c0_i32_0 = arith.constant 0 : i32
    %c0_i32_1 = arith.constant 0 : i32
    %c0_i32_2 = arith.constant 0 : i32
    return %c0_i32, %c0_i32_0, %c0_i32_1 : i32, i32, i32
  }
  func.func @transform_6(%arg0: i32) -> (i32, i32) {
    %c0_i32 = arith.constant 0 : i32
    %c0_i32_0 = arith.constant 0 : i32
    %c0_i32_1 = arith.constant 0 : i32
    return %c0_i32, %c0_i32_0 : i32, i32
  }
  func.func @transform_7(%arg0: i32) -> (i32, i32) {
    %c0_i32 = arith.constant 0 : i32
    %c0_i32_0 = arith.constant 0 : i32
    return %arg0, %c0_i32 : i32, i32
  }
}

</mosaic_0001>

<bundles_post_ra>
// kernel: dnn_block_forward.1
= control target key start
LH: loop header
LB: loop body
LE: loop exit
PB: predicated region body
PF: predicated region fallthrough
CT: control target
= control target key end

     0   :  { %12 = vsyncpa [#allocation3], 0  ;;  %s809_s0 = inlined_call_operand.hbm [shape: f32[4,8], index: 0, kind: input, shape index: {}]   ;;  %s810_s1 = inlined_call_operand.hbm [shape: bf16[1,8,64], index: 1, kind: input, shape index: {}]   ;;  %s811_s2 = inlined_call_operand.vmem [shape: f32[1,1,64], index: 2, kind: input, shape index: {}]   ;;  %s812_s3 = inlined_call_operand.vmem [shape: bf16[2,1,64,64], index: 3, kind: input, shape index: {}]   ;;  %s813_s4 = inlined_call_operand.vmem [shape: f32[2,1,1,64], index: 4, kind: input, shape index: {}]   ;;  %s814_s5 = inlined_call_operand.vmem [shape: bf16[1,64,8], index: 5, kind: input, shape index: {}]   ;;  %s815_s6 = inlined_call_operand.hbm [shape: f32[1,8], index: 6, kind: input, shape index: {}]   ;;  %s816_s7 = inlined_call_operand.hbm [shape: f32[4,8], index: 7, kind: output, shape index: {}]  }
   0x1   :  { %13 = vsyncpa [#allocation6], 0 }
   0x2   :  { %14 = vsyncpa [#allocation4], 0  ;;  %s646_s24 = smov [#allocation5]   ;;  %s647_s26 = smov [#allocation2]  }
   0x3   :  { %s31_s25 = sshll.u32 %s646_s24, 4  ;;  %s21_s27 = sshll.u32 %s647_s26, 4  ;;  %s32_s25 = int_to_ptr.vmem [resolvable:$true] %s31_s25  ;;  %s22_s27 = int_to_ptr.vmem [resolvable:$true] %s21_s27 }
   0x4   :  { %s552_s30 = scalar_lea.hbm %s810_s1, 64 }
   0x5   :  { %p553_p0 = scmp.ne.s32.totalorder %s810_s1, %s552_s30  ;;  %p556_p1 = scmp.lt.u32.totalorder %s552_s30, %s810_s1 }
   0x7   :  { %p558_p2 = pnand %p556_p1, %p553_p0 }
   0x9   :  { %561 = shalt.err (!%p558_p2)
}
   0xa   :  { %s562_s12 = scalar_lea.vmem %s32_s25, 64  ;;  %p567_p4 = scmp.lt.s32.totalorder %s32_s25, %s32_s25 }
   0xb   :  { %p563_p3 = scmp.ne.s32.totalorder %s32_s25, %s562_s12  ;;  %p568_p5 = scmp.lt.s32.totalorder %s562_s12, %s562_s12 }
   0xd   :  { %p569_p6 = por %p568_p5, %p567_p4 }
   0xf   :  { %p570_p7 = pnand %p569_p6, %p563_p3 }
  0x11   :  { %573 = shalt.err (!%p570_p7)
}
  0x12   :  { %34 = dma.hbm_to_vmem [thread:$0]  %s810_s1, 64, %s32_s25, [#allocation6]  }
  0x13   :  { %s574_s17 = scalar_lea.hbm %s809_s0, 64 }
  0x14   :  { %p575_p8 = scmp.ne.s32.totalorder %s809_s0, %s574_s17  ;;  %p578_p9 = scmp.lt.u32.totalorder %s574_s17, %s809_s0 }
  0x16   :  { %p580_p10 = pnand %p578_p9, %p575_p8 }
  0x18   :  { %583 = shalt.err (!%p580_p10)
}
  0x19   :  { %s584_s22 = scalar_lea.vmem %s22_s27, 64  ;;  %p589_p12 = scmp.lt.s32.totalorder %s22_s27, %s22_s27 }
  0x1a   :  { %p585_p11 = scmp.ne.s32.totalorder %s22_s27, %s584_s22  ;;  %p590_p13 = scmp.lt.s32.totalorder %s584_s22, %s584_s22 }
  0x1c   :  { %p591_p0 = por %p590_p13, %p589_p12 }
  0x1e   :  { %p592_p1 = pnand %p591_p0, %p585_p11 }
  0x20   :  { %595 = shalt.err (!%p592_p1)
}
  0x21   :  { %24 = dma.hbm_to_vmem [thread:$0]  %s809_s0, 64, %s22_s27, [#allocation3]  }
  0x22   :  { %s648_s24 = smov [#allocation7]   ;;  %s596_s29 = scalar_lea.hbm %s815_s6, 16 }
  0x23   :  { %s49_s25 = sshll.u32 %s648_s24, 4  ;;  %p597_p2 = scmp.ne.s32.totalorder %s815_s6, %s596_s29  ;;  %s50_s25 = int_to_ptr.vmem [resolvable:$true] %s49_s25 }
  0x24   :  { %p600_p3 = scmp.lt.u32.totalorder %s596_s29, %s815_s6 }
  0x26   :  { %p602_p4 = pnand %p600_p3, %p597_p2 }
  0x28   :  { %605 = shalt.err (!%p602_p4)
}
  0x29   :  { %s606_s11 = scalar_lea.vmem %s50_s25, 16  ;;  %s610_s0 = scalar_lea.vmem %s50_s25, 32 }
  0x2a   :  { %p607_p5 = scmp.ne.s32.totalorder %s50_s25, %s606_s11  ;;  %p611_p6 = scmp.lt.s32.totalorder %s50_s25, %s50_s25 }
  0x2b   :  { %p612_p7 = scmp.lt.s32.totalorder %s610_s0, %s606_s11 }
  0x2d   :  { %p613_p8 = por %p612_p7, %p611_p6 }
  0x2f   :  { %p614_p9 = pnand %p613_p8, %p607_p5 }
  0x31   :  { %617 = shalt.err (!%p614_p9)
}
  0x32   :  { %52 = dma.hbm_to_vmem [thread:$0]  %s815_s6, 16, %s50_s25, [#allocation6]  }
  0x33   :  { %640 = dma.done.wait [#allocation3], 64  }
  0x34   :  { %641 = vsyncadd [#allocation3], 4294967232 }
  0x35   :  { %642 = dma.done.wait [#allocation6], 80  }
  0x36   :  { %643 = vsyncadd [#allocation6], 4294967216  ;;  %v649_v0 = vmov 0.0   ;;  %vm650_vm0 = vmmov 0   ;;  %vm77_vm1 = vcmask 1043456   ;;  %vm73_vm2 = vcmask 64512  }
  0x37   :  { %480 = vmatprep.subr.bf16.mxu0 %v649_v0  ;;  %482 = vmatprep.mubr.msk.bf16.mxu0 %vm650_vm0, %v649_v0  ;;  %v65_v1 = vld [vmem:[#allocation5] sm:$0xf]  ;;  %v63_v2 = vld [vmem:[#allocation2] sm:$0xf]  ;;  %v529_v6 = vld [vmem:[%s812_s3 + $0x8] sm:$0xff]   ;;  %vm175_vm5 = vcmask 523264  }
  0x38   :  { %486 = vmatprep.subr.bf16.mxu1 %v649_v0  ;;  %494 = vmatprep.mubr.msk.bf16.mxu1 %vm650_vm0, %v649_v0  ;;  %v79_v3 = vsel %vm77_vm1, %v65_v1, 0  ;;  %v64_v4 = vpack.c.bf16 %v63_v2, %v63_v2  ;;  %v528_v5 = vld [vmem:[%s812_s3] sm:$0xff]   ;;  %v530_v7 = vld [vmem:[%s812_s3 + $0x10] sm:$0xff]   ;;  %v531_v8 = vld [vmem:[%s812_s3 + $0x18] sm:$0xff]   ;;  %vm416_vm10 = vcmask 60416  }
  0x39   :  { %481 = vmatpush3.bf16.msra.mxu0 %v79_v3  ;;  %487 = vmatpush3.bf16.msra.mxu1 %v528_v5  ;;  %v434_v9 = vld [vmem:[%s811_s2] ss:$0 sm:$0xff]  ;;  %v533_v29 = vld [vmem:[%s812_s3 + $0x28] sm:$0xff]   ;;  %v534_v30 = vld [vmem:[%s812_s3 + $0x30] sm:$0xff]  }
  0x3a   :  { %498 = vmatprep.subr.bf16.mxu0 %v649_v0  ;;  %488 = vmatprep.subr.bf16.mxu1 %v649_v0  ;;  %v532_v28 = vld [vmem:[%s812_s3 + $0x20] sm:$0xff]   ;;  %v535_v31 = vld [vmem:[%s812_s3 + $0x38] sm:$0xff]   ;;  %v537_v52 = vld [vmem:[%s814_s5 + $0x8] sm:$0xff]  }
  0x3b   :  { %v436_v32 = vld [vmem:[%s813_s4] ss:$0 sm:$0xff]  ;;  %v538_v53 = vld [vmem:[%s814_s5 + $0x10] sm:$0xff]   ;;  %v539_v54 = vld [vmem:[%s814_s5 + $0x18] sm:$0xff]  }
  0x3c   :  { %483 = vmatmul.mubr.msk.bf16.vlgmr.msra.gmra.mrb[0].mxu0 %vm73_vm2, %v64_v4  ;;  %v536_v51 = vld [vmem:[%s814_s5] sm:$0xff]  }
  0x3d   :  { %506 = vmatprep.mubr.msk.bf16.mxu0 %vm650_vm0, %v649_v0  ;;  %489 = vmatpush3.bf16.msra.mxu1 %v529_v6  ;;  %v451_v55 = vld [vmem:[%s813_s4 + $0x1] ss:$0 sm:$0xff]  ;;  %s651_s4 = smov [#allocation8]  }
  0x3e   :  { %490 = vmatprep.subr.bf16.mxu1 %v649_v0  ;;  %499 = vmatpush3.bf16.msra.mxu0 %v532_v28  ;;  %s424_s5 = sshll.u32 %s651_s4, 4  ;;  %s425_s5 = int_to_ptr.vmem [resolvable:$true] %s424_s5 }
  0x3f   :  { %500 = vmatprep.subr.bf16.mxu0 %v649_v0  ;;  %s618_s14 = scalar_lea.vmem %s425_s5, 64  ;;  %p623_p11 = scmp.lt.s32.totalorder %s425_s5, %s425_s5 }
  0x40   :  { %p619_p10 = scmp.ne.s32.totalorder %s425_s5, %s618_s14  ;;  %p624_p12 = scmp.lt.s32.totalorder %s618_s14, %s618_s14 }
  0x41   :  { %491 = vmatpush3.bf16.msra.mxu1 %v530_v7 }
  0x42   :  { %492 = vmatprep.subr.bf16.mxu1 %v649_v0  ;;  %501 = vmatpush3.bf16.msra.mxu0 %v533_v29  ;;  %p625_p13 = por %p624_p12, %p623_p11 }
  0x43   :  { %502 = vmatprep.subr.bf16.mxu0 %v649_v0 }
  0x44   :  { %p626_p0 = pnand %p625_p13, %p619_p10 }
  0x45   :  { %493 = vmatpush3.bf16.msra.mxu1 %v531_v8 }
  0x46   :  { %510 = vmatprep.subr.bf16.mxu1 %v649_v0  ;;  %503 = vmatpush3.bf16.msra.mxu0 %v534_v30 }
  0x47   :  { %504 = vmatprep.subr.bf16.mxu0 %v649_v0 }
  0x4a   :  { %505 = vmatpush3.bf16.msra.mxu0 %v535_v31 }
 0x10f   :  { %v115_v10 = vpop.f32.mrb[0].mxu0 }
 0x110   :  { %v116_v11 = vadd.f32 %v434_v9, %v115_v10  ;;  %v484_v12 = vpop.f32.mrb[1].mxu0  ;;  %v462_v10 = vld [vmem:[#allocation7] ss:$0 sm:$0xff] }
 0x111   :  { %v118_v13 = vpop.f32.mrb[2].mxu0 }
 0x112   :  { %v131_v14 = vmin.f32 %v116_v11, 20.0  ;;  %v485_v15 = vpop.f32.mrb[3].mxu0  ;;  %vm130_vm4 = vcmp.gt.f32.partialorder %v116_v11, 20.0 }
 0x114   :  { %v132_v16 = vmul.f32 1.442695, %v131_v14 }
 0x116   :  { %540 = vpow2.f32 %v132_v16 }
 0x120   :  { %v541_v17 = vpop.eup %540 }
 0x121   :  { %v134_v18 = vadd.f32 1.0, %v541_v17  ;;  %v137_v19 = vmul.f32 -0.5, %v541_v17  ;;  %v140_v21 = vand.u32 2147483647, %v541_v17 }
 0x123   :  { %542 = vlog2.f32 %v134_v18  ;;  %v138_v20 = vadd.f32 1.0, %v137_v19  ;;  %vm141_vm3 = vcmp.lt.f32.partialorder %v140_v21, 0.0004427343 }
 0x125   :  { %v139_v24 = vmul.f32 %v541_v17, %v138_v20 }
 0x12d   :  { %v543_v22 = vpop.eup %542 }
 0x12e   :  { %v136_v23 = vmul.f32 0.6931472, %v543_v22 }
 0x130   :  { %v142_v25 = vsel %vm141_vm3, %v139_v24, %v136_v23 }
 0x131   :  { %v143_v26 = vsel %vm130_vm4, %v116_v11, %v142_v25 }
 0x132   :  { %v144_v27 = vpack.c.bf16 %v143_v26, %v143_v26 }
 0x134   :  { %495 = vmatmul.mubr.msk.bf16.vlgmr.msra.gmra.mrb[0].mxu1 %vm175_vm5, %v144_v27 }
 0x135   :  { %518 = vmatprep.mubr.msk.bf16.mxu1 %vm650_vm0, %v649_v0  ;;  %511 = vmatpush3.bf16.msra.mxu1 %v536_v51 }
 0x136   :  { %512 = vmatprep.subr.bf16.mxu1 %v649_v0 }
 0x139   :  { %513 = vmatpush3.bf16.msra.mxu1 %v537_v52 }
 0x13a   :  { %514 = vmatprep.subr.bf16.mxu1 %v649_v0 }
 0x13d   :  { %515 = vmatpush3.bf16.msra.mxu1 %v538_v53 }
 0x13e   :  { %516 = vmatprep.subr.bf16.mxu1 %v649_v0 }
 0x141   :  { %517 = vmatpush3.bf16.msra.mxu1 %v539_v54 }
 0x207   :  { %v213_v33 = vpop.f32.mrb[0].mxu1 }
 0x208   :  { %v214_v34 = vadd.f32 %v436_v32, %v213_v33  ;;  %v496_v35 = vpop.f32.mrb[1].mxu1 }
 0x209   :  { %v216_v36 = vpop.f32.mrb[2].mxu1 }
 0x20a   :  { %v231_v37 = vmin.f32 %v214_v34, 20.0  ;;  %v497_v38 = vpop.f32.mrb[3].mxu1  ;;  %vm230_vm7 = vcmp.gt.f32.partialorder %v214_v34, 20.0 }
 0x20c   :  { %v232_v39 = vmul.f32 1.442695, %v231_v37 }
 0x20e   :  { %544 = vpow2.f32 %v232_v39 }
 0x218   :  { %v545_v40 = vpop.eup %544 }
 0x219   :  { %v234_v41 = vadd.f32 1.0, %v545_v40  ;;  %v237_v42 = vmul.f32 -0.5, %v545_v40  ;;  %v240_v44 = vand.u32 2147483647, %v545_v40 }
 0x21b   :  { %546 = vlog2.f32 %v234_v41  ;;  %v238_v43 = vadd.f32 1.0, %v237_v42  ;;  %vm241_vm6 = vcmp.lt.f32.partialorder %v240_v44, 0.0004427343 }
 0x21d   :  { %v239_v47 = vmul.f32 %v545_v40, %v238_v43 }
 0x225   :  { %v547_v45 = vpop.eup %546 }
 0x226   :  { %v236_v46 = vmul.f32 0.6931472, %v547_v45 }
 0x228   :  { %v242_v48 = vsel %vm241_vm6, %v239_v47, %v236_v46 }
 0x229   :  { %v243_v49 = vsel %vm230_vm7, %v214_v34, %v242_v48 }
 0x22a   :  { %v244_v50 = vpack.c.bf16 %v243_v49, %v243_v49 }
 0x22c   :  { %507 = vmatmul.mubr.msk.bf16.vlgmr.msra.gmra.mrb[4].mxu0 %vm175_vm5, %v244_v50 }
 0x2ff   :  { %v312_v56 = vpop.f32.mrb[4].mxu0 }
 0x300   :  { %v313_v57 = vadd.f32 %v451_v55, %v312_v56  ;;  %v508_v58 = vpop.f32.mrb[5].mxu0 }
 0x301   :  { %v315_v59 = vpop.f32.mrb[6].mxu0 }
 0x302   :  { %v320_v60 = vmin.f32 %v313_v57, 20.0  ;;  %v509_v61 = vpop.f32.mrb[7].mxu0  ;;  %vm319_vm9 = vcmp.gt.f32.partialorder %v313_v57, 20.0 }
 0x304   :  { %v321_v62 = vmul.f32 1.442695, %v320_v60 }
 0x306   :  { %548 = vpow2.f32 %v321_v62 }
 0x310   :  { %v549_v63 = vpop.eup %548 }
 0x311   :  { %v323_v1 = vadd.f32 1.0, %v549_v63  ;;  %v326_v0 = vmul.f32 -0.5, %v549_v63  ;;  %v329_v3 = vand.u32 2147483647, %v549_v63 }
 0x313   :  { %550 = vlog2.f32 %v323_v1  ;;  %v327_v2 = vadd.f32 1.0, %v326_v0  ;;  %vm330_vm8 = vcmp.lt.f32.partialorder %v329_v3, 0.0004427343 }
 0x315   :  { %v328_v6 = vmul.f32 %v549_v63, %v327_v2 }
 0x31d   :  { %v551_v4 = vpop.eup %550 }
 0x31e   :  { %v325_v5 = vmul.f32 0.6931472, %v551_v4 }
 0x320   :  { %v331_v7 = vsel %vm330_vm8, %v328_v6, %v325_v5 }
 0x321   :  { %v332_v8 = vsel %vm319_vm9, %v313_v57, %v331_v7 }
 0x322   :  { %v333_v9 = vpack.c.bf16 %v332_v8, %v332_v8 }
 0x324   :  { %519 = vmatmul.mubr.msk.bf16.vlgmr.msra.gmra.mrb[4].mxu1 %vm175_vm5, %v333_v9 }
 0x3f7   :  { %v403_v11 = vpop.f32.mrb[4].mxu1 }
 0x3f8   :  { %v415_v12 = vadd.f32 %v462_v10, %v403_v11  ;;  %v520_v13 = vpop.f32.mrb[5].mxu1 }
 0x3f9   :  { %v406_v14 = vpop.f32.mrb[6].mxu1 }
 0x3fa   :  { %v521_v15 = vpop.f32.mrb[7].mxu1  ;;  %417 = vst.msk [vmem:[#allocation8] sm:$0xf] %vm416_vm10, %v415_v12 }
 0x3fb   :  { %629 = shalt.err (!%p626_p0)
}
 0x3fc   :  { %s630_s17 = scalar_lea.hbm %s816_s7, 64 }
 0x3fd   :  { %p631_p1 = scmp.ne.s32.totalorder %s816_s7, %s630_s17  ;;  %p634_p2 = scmp.lt.u32.totalorder %s630_s17, %s816_s7 }
 0x3ff   :  { %p636_p3 = pnand %p634_p2, %p631_p1 }
 0x401   :  { %639 = shalt.err (!%p636_p3)
}
 0x402   :  { %427 = dma.vmem_to_hbm [thread:$0]  %s425_s5, 64, %s816_s7, [#allocation4]  }
 0x403   :  { %644 = dma.done.wait [#allocation4], 64  }
 0x404   :  { %645 = vsyncadd [#allocation4], 4294967232 }
 0x405   :  { %431 = vsyncpa [#allocation3], 1 }
 0x406   :  { %432 = vsyncpa [#allocation6], 1 }
 0x407   :  { %433 = vsyncpa [#allocation4], 1 }

</bundles_post_ra>
